<compile_context>
chip_gen: v6e
topology: v6e:2x2x1
jax: 0.10.0
libtpu: 0.0.40
codegen_flags: <defaults>
</compile_context>

<pallas_src>
import math

import jax
import jax.numpy as jnp
from jax import lax
from jax.experimental import pallas as pl
from jax.experimental.pallas import tpu as pltpu


def _round_up(x, m):
    return (x + m - 1) // m * m


def _pick_cout_tile(c_out, max_tile=128):
    """Largest divisor of c_out that is <= max_tile and a multiple of 8 (or c_out)."""
    if c_out <= max_tile:
        return c_out
    for t in (128, 64, 32, 16, 8):
        if t <= max_tile and c_out % t == 0:
            return t
    return c_out


def dilated_conv_block(x, weight, bias=None, dilation=1, compute_dtype=jnp.bfloat16):
    """Forward pass of DilatedConvBlock.

    x:      (N, C_in, H, W)  float32, NCHW
    weight: (C_out, C_in, 3, 3)  (PyTorch OIHW)
    bias:   (C_out,)  -- accepted for API parity but mathematically cancelled by
            InstanceNorm2d(affine=False); intentionally not used.
    returns (N, C_out, H, W) float32
    """
    del bias  # cancels exactly under InstanceNorm (mean' = mean + b, var' = var)

    N, C_in, H, W = x.shape
    C_out = weight.shape[0]
    d = int(dilation)
    Wp = W + 2 * d

    # Row stride Wr chosen so that l_out = H*Wr is a multiple of 128 (lane-dense output
    # and a free reshape back to (H, Wr) in the wrapper).
    g = 128 // math.gcd(H, 128)
    Wr = _round_up(Wp, g)
    l_out = H * Wr
    max_off = 2 * d * Wr + 2 * d                 # largest tap shift in flat coords

    # Extra bottom rows so every lane-shifted slice stays in bounds.
    needed = l_out + max_off
    base = (H + 2 * d) * Wr
    extra_rows = max(0, -(-(needed - base) // Wr))
    H_tot = H + 2 * d + extra_rows
    l_in = H_tot * Wr

    # Pad channels to a sublane multiple so the stacked-tap scratch stores are aligned.
    C_in_p = _round_up(C_in, 8)

    # Single fused pad (+ channel pad) + cast, then a free reshape to the flat layout.
    x_pad = jnp.pad(x, ((0, 0), (0, C_in_p - C_in),
                        (d, d + extra_rows), (d, Wr - W - d)))
    x_flat = x_pad.reshape(N, C_in_p, l_in).astype(compute_dtype)

    # Weights reshaped to (C_out, 9*C_in_p), K ordered tap-major / channel-minor to
    # match the stacked slab layout; padded channel slots are zero.
    w_t = jnp.transpose(weight, (0, 2, 3, 1))                    # (C_out, 3, 3, C_in)
    w_t = jnp.pad(w_t, ((0, 0), (0, 0), (0, 0), (0, C_in_p - C_in)))
    w2 = w_t.reshape(C_out, 9 * C_in_p).astype(compute_dtype)

    # Validity mask over the flat output axis: column index (p % Wr) < W.
    p_idx = jnp.arange(l_out, dtype=jnp.int32)
    mask = ((p_idx % Wr) < W).astype(jnp.float32).reshape(1, l_out)

    inv_hw = 1.0 / float(H * W)                  # compile-time constant, no in-kernel div

    c_tile = _pick_cout_tile(C_out)
    n_ctiles = C_out // c_tile

    def kernel(x_ref, w_ref, m_ref, o_ref, xs_ref):
        # x_ref : (C_in_p, l_in)   flat padded image (batch dim squeezed), compute dtype
        # w_ref : (c_tile, 9*C_in_p)
        # m_ref : (1, l_out) f32
        # o_ref : (c_tile, l_out) f32
        # xs_ref: (9*C_in_p, l_out) VMEM scratch -- stacked lane-shifted taps

        # Build the stacked-tap slab once per image; reused across all C_out tiles
        # (the C_out grid axis is "arbitrary", so c==0 always runs first per image).
        @pl.when(pl.program_id(1) == 0)
        def _build_taps():
            for t in range(9):                                   # static, unrolled
                off = (t // 3) * d * Wr + (t % 3) * d            # static python int
                xs_ref[pl.ds(t * C_in_p, C_in_p), :] = x_ref[:, pl.ds(off, l_out)]

        # ---- Conv: single MXU matmul, K = 9*C_in_p, f32 accumulation ----
        y = jnp.dot(w_ref[...], xs_ref[...], preferred_element_type=jnp.float32)

        # ---- InstanceNorm2d (affine=False, eps=1e-5, biased var), one masked pass ----
        m = m_ref[...]                                           # (1, l_out)
        ym = y * m                                               # m is 0/1
        s = jnp.sum(ym, axis=-1, keepdims=True)                  # (c_tile, 1)
        ss = jnp.sum(ym * ym, axis=-1, keepdims=True)            # = sum(y^2 * m)
        mean = s * inv_hw
        var = jnp.maximum(ss * inv_hw - mean * mean, 0.0)
        yn = (y - mean) * lax.rsqrt(var + 1e-5)

        # ---- LeakyReLU(0.2); pad columns hold finite garbage, cropped by wrapper ----
        o_ref[...] = jnp.maximum(yn, 0.2 * yn).astype(o_ref.dtype)

    # VMEM budget: double-buffered input/weight/mask/output blocks + tap scratch + temp.
    itemsize = jnp.dtype(compute_dtype).itemsize
    need = (2 * C_in_p * l_in * itemsize
            + 2 * c_tile * 9 * C_in_p * itemsize
            + 2 * l_out * 4
            + 2 * c_tile * l_out * 4
            + 9 * C_in_p * l_out * itemsize
            + c_tile * l_out * 4)
    vmem_cap = 128 * 1024 * 1024
    try:
        vmem_cap = int(pltpu.get_tpu_info().vmem_capacity_bytes)
    except Exception:
        pass
    vmem_limit = int(min(int(0.80 * vmem_cap),
                         max(16 * 1024 * 1024, need + 8 * 1024 * 1024)))

    out_flat = pl.pallas_call(
        kernel,
        out_shape=jax.ShapeDtypeStruct((N, C_out, l_out), jnp.float32),
        grid_spec=pltpu.PrefetchScalarGridSpec(
            num_scalar_prefetch=0,
            grid=(N, n_ctiles),
            in_specs=[
                pl.BlockSpec((None, C_in_p, l_in), lambda n, c: (n, 0, 0)),
                pl.BlockSpec((c_tile, 9 * C_in_p), lambda n, c: (c, 0)),
                pl.BlockSpec((1, l_out), lambda n, c: (0, 0)),
            ],
            out_specs=pl.BlockSpec((None, c_tile, l_out), lambda n, c: (n, c, 0)),
            scratch_shapes=[pltpu.VMEM((9 * C_in_p, l_out), compute_dtype)],
        ),
        compiler_params=pltpu.CompilerParams(
            dimension_semantics=("parallel", "arbitrary"),
            vmem_limit_bytes=vmem_limit),
    )(x_flat, w2, mask)

    # Free reshape (l_out == H*Wr), then only a trailing-dim crop remains.
    out = out_flat.reshape(N, C_out, H, Wr)[:, :, :, :W]
    return out


def _reference(x, weight, bias, dilation):
    """Pure-JAX reference matching PyTorch semantics (bias included on purpose)."""
    d = dilation
    y = lax.conv_general_dilated(
        x, weight,
        window_strides=(1, 1),
        padding=[(d, d), (d, d)],
        rhs_dilation=(d, d),
        dimension_numbers=("NCHW", "OIHW", "NCHW"),
    )
    y = y + bias[None, :, None, None]
    mean = jnp.mean(y, axis=(2, 3), keepdims=True)
    var = jnp.mean(jnp.square(y - mean), axis=(2, 3), keepdims=True)
    yn = (y - mean) * lax.rsqrt(var + 1e-5)
    return jnp.where(yn >= 0, yn, 0.2 * yn)


if __name__ == "__main__":
    # Small deterministic setup consistent with the module.
    N, C_in, C_out, H, W = 2, 4, 8, 16, 16
    dilation = 2

    key = jax.random.PRNGKey(0)
    kx, kw, kb = jax.random.split(key, 3)
    x = jax.random.normal(kx, (N, C_in, H, W), dtype=jnp.float32)
    weight = jax.random.normal(kw, (C_out, C_in, 3, 3), dtype=jnp.float32) * 0.1
    bias = jax.random.normal(kb, (C_out,), dtype=jnp.float32) * 0.1

    ref = _reference(x, weight, bias, dilation)

    # f32 MXU path: tight check against the pure-JAX reference (bias cancellation
    # under InstanceNorm is verified here since the reference keeps the bias).
    out_f32 = jax.block_until_ready(
        dilated_conv_block(x, weight, bias, dilation=dilation,
                           compute_dtype=jnp.float32))
    assert out_f32.shape == (N, C_out, H, W)
    assert jnp.allclose(out_f32, ref, atol=1e-3, rtol=1e-3), "f32 mismatch vs reference"

    # bf16 MXU path (default; fast on v5e/v6e/v7x): looser tolerance.
    out_bf16 = jax.block_until_ready(
        dilated_conv_block(x, weight, bias, dilation=dilation))
    assert out_bf16.shape == (N, C_out, H, W)
    assert jnp.allclose(out_bf16, ref, atol=4e-2, rtol=4e-2), "bf16 mismatch vs reference"

    print("KERNEL_OK")
</pallas_src>

<mosaic_0001>
module attributes {stable_mosaic.version = 11 : i64} {
  func.func @kernel(%arg0: i32, %arg1: i32, %arg2: memref<1x8x504xf32, #tpu.memory_space<vmem>>, %arg3: memref<8x72xf32, #tpu.memory_space<vmem>>, %arg4: memref<1x384xf32, #tpu.memory_space<vmem>>, %arg5: memref<1x8x384xf32, #tpu.memory_space<vmem>>, %arg6: memref<72x384xf32, #tpu.memory_space<vmem>>) attributes {dimension_semantics = [#tpu.dimension_semantics<parallel>, #tpu.dimension_semantics<arbitrary>], iteration_bounds = array<i64: 2, 1>, scalar_prefetch = 0 : i64, scratch_operands = 1 : i64, tpu.core_type = #tpu.core_type<tc>, window_params = [{transform_indices = @transform_0, window_bounds = array<i64: 1, 8, 504>}, {transform_indices = @transform_1, window_bounds = array<i64: 8, 72>}, {pipeline_mode = #tpu.pipeline_mode<synchronous>, transform_indices = @transform_2, window_bounds = array<i64: 1, 384>}, {transform_indices = @transform_3, window_bounds = array<i64: 1, 8, 384>}]} {
    %c0_i32 = arith.constant 0 : i32
    %0 = arith.cmpi eq, %arg1, %c0_i32 : i32
    %1 = arith.extui %0 : i1 to i32
    %c0_i32_0 = arith.constant 0 : i32
    %2 = arith.cmpi ne, %1, %c0_i32_0 : i32
    scf.if %2 {
      %c0_16 = arith.constant 0 : index
      %c0_17 = arith.constant 0 : index
      %c0_18 = arith.constant 0 : index
      %35 = vector.load %arg2[%c0_16, %c0_17, %c0_18] : memref<1x8x504xf32, #tpu.memory_space<vmem>>, vector<1x8x384xf32>
      %36 = vector.shape_cast %35 : vector<1x8x384xf32> to vector<8x384xf32>
      %c0_19 = arith.constant 0 : index
      %c0_20 = arith.constant 0 : index
      %37 = vector.load %arg6[%c0_19, %c0_20] : memref<72x384xf32, #tpu.memory_space<vmem>>, vector<8x384xf32>
      tpu.vector_store %arg6[%c0_19, %c0_20], %36 {strides = array<i32>} : memref<72x384xf32, #tpu.memory_space<vmem>>, vector<8x384xf32>,
      %c0_21 = arith.constant 0 : index
      %c0_22 = arith.constant 0 : index
      %c2 = arith.constant 2 : index
      %38 = vector.load %arg2[%c0_21, %c0_22, %c2] : memref<1x8x504xf32, #tpu.memory_space<vmem>>, vector<1x8x384xf32>
      %39 = vector.shape_cast %38 : vector<1x8x384xf32> to vector<8x384xf32>
      %c8 = arith.constant 8 : index
      %c0_23 = arith.constant 0 : index
      %40 = vector.load %arg6[%c8, %c0_23] : memref<72x384xf32, #tpu.memory_space<vmem>>, vector<8x384xf32>
      tpu.vector_store %arg6[%c8, %c0_23], %39 {strides = array<i32>} : memref<72x384xf32, #tpu.memory_space<vmem>>, vector<8x384xf32>,
      %c0_24 = arith.constant 0 : index
      %c0_25 = arith.constant 0 : index
      %c4 = arith.constant 4 : index
      %41 = vector.load %arg2[%c0_24, %c0_25, %c4] : memref<1x8x504xf32, #tpu.memory_space<vmem>>, vector<1x8x384xf32>
      %42 = vector.shape_cast %41 : vector<1x8x384xf32> to vector<8x384xf32>
      %c16 = arith.constant 16 : index
      %c0_26 = arith.constant 0 : index
      %43 = vector.load %arg6[%c16, %c0_26] : memref<72x384xf32, #tpu.memory_space<vmem>>, vector<8x384xf32>
      tpu.vector_store %arg6[%c16, %c0_26], %42 {strides = array<i32>} : memref<72x384xf32, #tpu.memory_space<vmem>>, vector<8x384xf32>,
      %c0_27 = arith.constant 0 : index
      %c0_28 = arith.constant 0 : index
      %c48 = arith.constant 48 : index
      %44 = vector.load %arg2[%c0_27, %c0_28, %c48] : memref<1x8x504xf32, #tpu.memory_space<vmem>>, vector<1x8x384xf32>
      %45 = vector.shape_cast %44 : vector<1x8x384xf32> to vector<8x384xf32>
      %c24 = arith.constant 24 : index
      %c0_29 = arith.constant 0 : index
      %46 = vector.load %arg6[%c24, %c0_29] : memref<72x384xf32, #tpu.memory_space<vmem>>, vector<8x384xf32>
      tpu.vector_store %arg6[%c24, %c0_29], %45 {strides = array<i32>} : memref<72x384xf32, #tpu.memory_space<vmem>>, vector<8x384xf32>,
      %c0_30 = arith.constant 0 : index
      %c0_31 = arith.constant 0 : index
      %c50 = arith.constant 50 : index
      %47 = vector.load %arg2[%c0_30, %c0_31, %c50] : memref<1x8x504xf32, #tpu.memory_space<vmem>>, vector<1x8x384xf32>
      %48 = vector.shape_cast %47 : vector<1x8x384xf32> to vector<8x384xf32>
      %c32 = arith.constant 32 : index
      %c0_32 = arith.constant 0 : index
      %49 = vector.load %arg6[%c32, %c0_32] : memref<72x384xf32, #tpu.memory_space<vmem>>, vector<8x384xf32>
      tpu.vector_store %arg6[%c32, %c0_32], %48 {strides = array<i32>} : memref<72x384xf32, #tpu.memory_space<vmem>>, vector<8x384xf32>,
      %c0_33 = arith.constant 0 : index
      %c0_34 = arith.constant 0 : index
      %c52 = arith.constant 52 : index
      %50 = vector.load %arg2[%c0_33, %c0_34, %c52] : memref<1x8x504xf32, #tpu.memory_space<vmem>>, vector<1x8x384xf32>
      %51 = vector.shape_cast %50 : vector<1x8x384xf32> to vector<8x384xf32>
      %c40 = arith.constant 40 : index
      %c0_35 = arith.constant 0 : index
      %52 = vector.load %arg6[%c40, %c0_35] : memref<72x384xf32, #tpu.memory_space<vmem>>, vector<8x384xf32>
      tpu.vector_store %arg6[%c40, %c0_35], %51 {strides = array<i32>} : memref<72x384xf32, #tpu.memory_space<vmem>>, vector<8x384xf32>,
      %c0_36 = arith.constant 0 : index
      %c0_37 = arith.constant 0 : index
      %c96 = arith.constant 96 : index
      %53 = vector.load %arg2[%c0_36, %c0_37, %c96] : memref<1x8x504xf32, #tpu.memory_space<vmem>>, vector<1x8x384xf32>
      %54 = vector.shape_cast %53 : vector<1x8x384xf32> to vector<8x384xf32>
      %c48_38 = arith.constant 48 : index
      %c0_39 = arith.constant 0 : index
      %55 = vector.load %arg6[%c48_38, %c0_39] : memref<72x384xf32, #tpu.memory_space<vmem>>, vector<8x384xf32>
      tpu.vector_store %arg6[%c48_38, %c0_39], %54 {strides = array<i32>} : memref<72x384xf32, #tpu.memory_space<vmem>>, vector<8x384xf32>,
      %c0_40 = arith.constant 0 : index
      %c0_41 = arith.constant 0 : index
      %c98 = arith.constant 98 : index
      %56 = vector.load %arg2[%c0_40, %c0_41, %c98] : memref<1x8x504xf32, #tpu.memory_space<vmem>>, vector<1x8x384xf32>
      %57 = vector.shape_cast %56 : vector<1x8x384xf32> to vector<8x384xf32>
      %c56 = arith.constant 56 : index
      %c0_42 = arith.constant 0 : index
      %58 = vector.load %arg6[%c56, %c0_42] : memref<72x384xf32, #tpu.memory_space<vmem>>, vector<8x384xf32>
      tpu.vector_store %arg6[%c56, %c0_42], %57 {strides = array<i32>} : memref<72x384xf32, #tpu.memory_space<vmem>>, vector<8x384xf32>,
      %c0_43 = arith.constant 0 : index
      %c0_44 = arith.constant 0 : index
      %c100 = arith.constant 100 : index
      %59 = vector.load %arg2[%c0_43, %c0_44, %c100] : memref<1x8x504xf32, #tpu.memory_space<vmem>>, vector<1x8x384xf32>
      %60 = vector.shape_cast %59 : vector<1x8x384xf32> to vector<8x384xf32>
      %c64 = arith.constant 64 : index
      %c0_45 = arith.constant 0 : index
      %61 = vector.load %arg6[%c64, %c0_45] : memref<72x384xf32, #tpu.memory_space<vmem>>, vector<8x384xf32>
      tpu.vector_store %arg6[%c64, %c0_45], %60 {strides = array<i32>} : memref<72x384xf32, #tpu.memory_space<vmem>>, vector<8x384xf32>,
    } else {
    }
    %c0 = arith.constant 0 : index
    %c0_1 = arith.constant 0 : index
    %3 = vector.load %arg3[%c0, %c0_1] : memref<8x72xf32, #tpu.memory_space<vmem>>, vector<8x72xf32>
    %c0_2 = arith.constant 0 : index
    %c0_3 = arith.constant 0 : index
    %4 = vector.load %arg6[%c0_2, %c0_3] : memref<72x384xf32, #tpu.memory_space<vmem>>, vector<72x384xf32>
    %cst = arith.constant dense<0.000000e+00> : vector<8x384xf32>
    %5 = tpu.matmul %3, %4, %cst {dimension_numbers = #tpu.dot_dimension_numbers<[1], [0], [0], [1], [0, 0, 1, 1], [], []>} : vector<8x72xf32>, vector<72x384xf32>, vector<8x384xf32> -> vector<8x384xf32>
    %c0_4 = arith.constant 0 : index
    %c0_5 = arith.constant 0 : index
    %6 = vector.load %arg4[%c0_4, %c0_5] : memref<1x384xf32, #tpu.memory_space<vmem>>, vector<1x384xf32>
    %7 = vector.broadcast %6 : vector<1x384xf32> to vector<8x384xf32>
    %8 = arith.mulf %5, %7 : vector<8x384xf32>
    %cst_6 = arith.constant dense<0.000000e+00> : vector<8xf32>
    %9 = vector.multi_reduction <add>, %8, %cst_6 [1] : vector<8x384xf32> to vector<8xf32>
    %10 = vector.shape_cast %9 : vector<8xf32> to vector<8x1xf32>
    %11 = arith.mulf %8, %8 : vector<8x384xf32>
    %cst_7 = arith.constant dense<0.000000e+00> : vector<8xf32>
    %12 = vector.multi_reduction <add>, %11, %cst_7 [1] : vector<8x384xf32> to vector<8xf32>
    %13 = vector.shape_cast %12 : vector<8xf32> to vector<8x1xf32>
    %cst_8 = arith.constant 3.906250e-03 : f32
    %14 = vector.broadcast %cst_8 : f32 to vector<8x1xf32>
    %15 = arith.mulf %10, %14 : vector<8x1xf32>
    %cst_9 = arith.constant 3.906250e-03 : f32
    %16 = vector.broadcast %cst_9 : f32 to vector<8x1xf32>
    %17 = arith.mulf %13, %16 : vector<8x1xf32>
    %18 = arith.mulf %15, %15 : vector<8x1xf32>
    %19 = arith.subf %17, %18 : vector<8x1xf32>
    %cst_10 = arith.constant 0.000000e+00 : f32
    %20 = vector.broadcast %cst_10 : f32 to vector<8x1xf32>
    %21 = arith.maximumf %19, %20 : vector<8x1xf32>
    %22 = vector.broadcast %15 : vector<8x1xf32> to vector<8x384xf32>
    %23 = arith.subf %5, %22 : vector<8x384xf32>
    %cst_11 = arith.constant 9.99999974E-6 : f32
    %24 = vector.broadcast %cst_11 : f32 to vector<8x1xf32>
    %25 = arith.addf %21, %24 : vector<8x1xf32>
    %26 = math.rsqrt %25 : vector<8x1xf32>
    %27 = vector.broadcast %26 : vector<8x1xf32> to vector<8x384xf32>
    %28 = arith.mulf %23, %27 : vector<8x384xf32>
    %cst_12 = arith.constant 2.000000e-01 : f32
    %29 = vector.broadcast %cst_12 : f32 to vector<8x384xf32>
    %30 = arith.mulf %29, %28 : vector<8x384xf32>
    %31 = arith.maximumf %28, %30 : vector<8x384xf32>
    %c0_13 = arith.constant 0 : index
    %c0_14 = arith.constant 0 : index
    %c0_15 = arith.constant 0 : index
    %32 = vector.load %arg5[%c0_13, %c0_14, %c0_15] : memref<1x8x384xf32, #tpu.memory_space<vmem>>, vector<1x8x384xf32>
    %33 = vector.shape_cast %32 : vector<1x8x384xf32> to vector<8x384xf32>
    %34 = vector.shape_cast %31 : vector<8x384xf32> to vector<1x8x384xf32>
    tpu.vector_store %arg5[%c0_13, %c0_14, %c0_15], %34 {strides = array<i32>} : memref<1x8x384xf32, #tpu.memory_space<vmem>>, vector<1x8x384xf32>,
    return
  }
  func.func @transform_0(%arg0: i32, %arg1: i32) -> (i32, i32, i32) {
    %c0_i32 = arith.constant 0 : i32
    %c0_i32_0 = arith.constant 0 : i32
    %c0_i32_1 = arith.constant 0 : i32
    return %arg0, %c0_i32, %c0_i32_0 : i32, i32, i32
  }
  func.func @transform_1(%arg0: i32, %arg1: i32) -> (i32, i32) {
    %c0_i32 = arith.constant 0 : i32
    %c0_i32_0 = arith.constant 0 : i32
    return %arg1, %c0_i32 : i32, i32
  }
  func.func @transform_2(%arg0: i32, %arg1: i32) -> (i32, i32) {
    %c0_i32 = arith.constant 0 : i32
    %c0_i32_0 = arith.constant 0 : i32
    %c0_i32_1 = arith.constant 0 : i32
    return %c0_i32, %c0_i32_0 : i32, i32
  }
  func.func @transform_3(%arg0: i32, %arg1: i32) -> (i32, i32, i32) {
    %c0_i32 = arith.constant 0 : i32
    %c0_i32_0 = arith.constant 0 : i32
    return %arg0, %arg1, %c0_i32 : i32, i32, i32
  }
}

</mosaic_0001>

<bundles_post_ra>
// kernel: tpu_custom_call.1
= control target key start
LH: loop header
LB: loop body
LE: loop exit
PB: predicated region body
PF: predicated region fallthrough
CT: control target
= control target key end

     0   :  { %8 = vsyncpa [#allocation4], 0  ;;  %s1328_s0 = inlined_call_operand.hbm [shape: f32[2,8,504], index: 0, kind: input, shape index: {}]   ;;  %s1329_s1 = inlined_call_operand.hbm [shape: f32[8,72], index: 1, kind: input, shape index: {}]   ;;  %s1330_s2 = inlined_call_operand.vmem [shape: f32[1,384], index: 2, kind: input, shape index: {}]   ;;  %s1331_s3 = inlined_call_operand.hbm [shape: f32[2,8,384], index: 3, kind: output, shape index: {}]  }
   0x1   :  { %10 = vsyncpa [#allocation4 + $0x1], 0 }
   0x2   :  { %11 = vsyncpa [#allocation7], 0 }
   0x3   :  { %12 = vsyncpa [#allocation5], 0 }
   0x4   :  { %14 = vsyncpa [#allocation5 + $0x1], 0  ;;  %s1083_s12 = smov 0   ;;  %s1085_s13 = smov 0  }
   0x5   :  { %s1087_s14 = smov 0   ;;  %s1089_s15 = smov 0  }
   0x6   :  { %s1091_s16 = smov 0   ;;  %s1093_s17 = smov 0  }
   0x7 LB: > { %s775_s18 = sadd.s32 4294967295, %s1048_s17   ;;  %s776_s19 = sadd.s32 4294967294, %s1048_s17   ;;  %s1048_s17 = sphi %s1093_s17, %s20_s17   ;;  %s1044_s16 = sphi %s1091_s16, %s1348_s16   ;;  %s1040_s15 = sphi %s1089_s15, %s1347_s15   ;;  %s1036_s14 = sphi %s1087_s14, %s1346_s14   ;;  %s1032_s13 = sphi %s1085_s13, %s1345_s13   ;;  %s1028_s12 = sphi %s1083_s12, %s1344_s12  }
   0x8   : > { %p52_p0 = scmp.ne.s32.totalorder %s1032_s13, %s1028_s12  ;;  %p1117_p1 = scmp.eq.s32.totalorder %s775_s18, 0 }
   0x9   : > { %p1121_p2 = scmp.eq.s32.totalorder %s775_s18, 1  ;;  %p131_p3 = scmp.eq.s32.totalorder %s776_s19, 1 }
   0xa   : > { %p1127_p4 = por %p1117_p1, %p52_p0  ;;  %p777_p5 = scmp.ge.s32.totalorder %s1048_s17, 1 }
   0xb   : > { %p1132_p6 = por %p131_p3, %p52_p0  ;;  %p138_p7 = scmp.lt.s32.totalorder %s1048_s17, 3 }
   0xc   : > { %s1335_s22 = scalar_select %p1127_p4, 1, 0 }
   0xd   : > { %s1336_s23 = scalar_select %p1132_p6, 1, 0 }
   0xe   : > { %p1137_p8 = pnand %p777_p5, %p138_p7  ;;  %s1050_s25 = smov [#allocation6]  }
   0xf   : > { %s153_s26 = sshll.u32 %s1050_s25, 4  ;;  %s32_s28 = sadd.s32 1, %s1044_s16  ;;  %s154_s26 = int_to_ptr.vmem [resolvable:$true] %s153_s26 }
  0x10   : > { %p833_p10 = pneg %p1137_p8  ;;  %s39_s29 = sadd.s32 1, %s1036_s14 }
  0x11   : > { %p34_p12 = scmp.ge.s32.totalorder %s32_s28, 2  ;;  %s921_s30 = scalar_lea.vmem %s154_s26, 128 }
  0x12   : > { %p1146_p11 = pnand %p833_p10, %p1117_p1  ;;  %p922_p0 = scmp.ne.s32.totalorder %s154_s26, %s921_s30 }
  0x13   : > { %p929_p7 = scmp.lt.s32.totalorder %s154_s26, %s154_s26  ;;  %p930_p6 = scmp.lt.s32.totalorder %s921_s30, %s921_s30 }
  0x14   : > { %p912_p13 = pneg %p1146_p11 }
  0x15   : > { %p931_p9 = por %p930_p6, %p929_p7 }
  0x16   : > { %p924_p3 = pnand %p922_p0, %p912_p13 }
  0x18   : > { %p925_p5 = pneg %p924_p3 }
  0x1a   : > { %p932_p4 = pnand %p931_p9, %p925_p5 }
  0x1c   : > { %935 = shalt.err (!%p932_p4)
}
  0x1d   : > { %836 = dma.hbm_to_vmem [thread:$0]  (!%p1146_p11), %s1329_s1, 128, %s154_s26, [#allocation7]  }
  0x1e   : > { %s1350_s28 = smov (%p34_p12, %s32_s28), 0  ;;  %p46_p6 = scmp.ne.s32.totalorder %s1036_s14, %s1032_s13 }
  0x1f   : > { %p47_p4 = scmp.eq.s32.totalorder %s1048_s17, 0  ;;  %s36_s6 = ssub.s32 %s1044_s16, %s1350_s28 }
  0x20   : > { %p846_p9 = scmp.lt.s32.totalorder %s1048_s17, 2  ;;  %p37_p10 = scmp.eq.s32.totalorder %s36_s6, 0 }
  0x21   : > { %p48_p13 = por %p47_p4, %p46_p6  ;;  %p1169_p0 = por %p1121_p2, %p46_p6 }
  0x22   : > { %s167_s8 = sand.u32 1, %s1036_s14   ;;  %s791_s11 = sshll.u32 %s1044_s16, 9 }
  0x23   : > { %s1175_s9 = scalar_select %p37_p10, %s1036_s14, %s39_s29  }
  0x24   : > { %s780_s10 = sshll.u32 %s167_s8, 5  ;;  %s177_s25 = scalar_lea.hbm %s1328_s0, %s791_s11 }
  0x25   : > { %s171_s26 = scalar_lea.vmem [#allocation3], %s780_s10  ;;  %p1181_p11 = pnand %p846_p9, %p48_p13 }
  0x26   : > { %s179_s27 = sshll.u32 %s171_s26, 4  ;;  %s168_s21 = scalar_lea.sflag [#allocation4], %s167_s8  ;;  %s180_s27 = int_to_ptr.vmem [resolvable:$true] %s179_s27 }
  0x27   : > { %p938_p2 = pneg %p1181_p11  ;;  %s949_s4 = scalar_lea.vmem %s180_s27, 512 }
  0x28   : > { %p950_p12 = scmp.ne.s32.totalorder %s180_s27, %s949_s4  ;;  %s1051_s29 = smov [#allocation3]  }
  0x29   : > { %s954_s5 = sshll.u32 %s1051_s29, 4  ;;  %s955_s5 = int_to_ptr.vmem [resolvable:$false] %s954_s5 }
  0x2a   : > { %p952_p3 = pnand %p950_p12, %p938_p2  ;;  %s956_s6 = scalar_lea.vmem %s955_s5, 1024 }
  0x2b   : > { %p957_p7 = scmp.lt.s32.totalorder %s180_s27, %s955_s5  ;;  %p958_p6 = scmp.lt.s32.totalorder %s956_s6, %s949_s4 }
  0x2c   : > { %p953_p5 = pneg %p952_p3 }
  0x2d   : > { %p959_p4 = por %p958_p6, %p957_p7 }
  0x2f   : > { %p960_p10 = pnand %p959_p4, %p953_p5 }
  0x31   : > { %963 = shalt.err (!%p960_p10)
}
  0x32   : > { %840 = dma.hbm_to_vmem [thread:$0]  (!%p1181_p11), %s177_s25, 512, %s180_s27, %s168_s21  }
  0x33   : > { %188 = sbr.rel (%p1137_p8) target bundleno = 620 (0x26c), region = 32  ;;  %s1192_s8 = sand.u32 (!%p1137_p8), 1, %s1032_s13  }
  0x34   : > { %s784_s10 = sshll.u32 (!%p1137_p8), %s1192_s8, 5  ;;  %s191_s11 = scalar_lea.sflag (!%p1137_p8), [#allocation4], %s1192_s8 }
  0x35   : > { %s194_s18 = scalar_lea.vmem (!%p1137_p8), [#allocation3], %s784_s10  ;;  %p1341_p9 = scmp.ne.s32.totalorder (!%p1137_p8), %s1335_s22, 0 }
  0x38   : > { %1015 = dma.done.wait (%p1341_p9), %s191_s11, 512  }
  0x39   : > { %1017 = vsyncadd (%p1341_p9), %s191_s11, 4294966784 }
  0x3a   : > { %1019 = dma.done.wait (%p1117_p1), [#allocation7], 128  }
  0x3b   : > { %1021 = vsyncadd (%p1117_p1), [#allocation7], 4294967168  ;;  %v1204_v0 = vld [vmem:[%s194_s18 + $0x8] sm:$0xff]  ;;  %v1206_v1 = vld [vmem:[%s194_s18] sm:$0xff]  ;;  %s1052_s24 = smov 28   ;;  %v1053_v3 = vmov 0.0   ;;  %v614_v62 = vlaneseq }
  0x3c   : > { %423 = vrot.lane.b32.xlu0 %v1204_v0, %s1052_s24  ;;  %421 = vrot.lane.b32.xlu1 %v1206_v1, %s1052_s24  ;;  %v1210_v2 = vld [vmem:[%s194_s18 + $0x10] sm:$0xff]  ;;  %s1054_s20 = smov 30   ;;  %s1055_s22 = smov 32   ;;  %v416_v4 = vld [vmem:[%s194_s18 + $0x18] sm:$0xff]  ;;  %vm1061_vm0 = vmmov 0   ;;  %vm429_vm1 = vcmask 228352  }
  0x3d   : > { %802 = vmatprep.subr.mxu1 %v1053_v3  ;;  %535 = vmatprep.mubr.f32.mxu0 %v1053_v3  ;;  %s1056_s19 = smov 76   ;;  %s1057_s25 = smov 78   ;;  %vm403_vm2 = vcmask 244736   ;;  %vm377_vm3 = vcmask 261120   ;;  %vm351_vm4 = vcmask 621568   ;;  %vm325_vm5 = vcmask 637952  }
  0x3e   : > { %s1058_s26 = smov 80   ;;  %s1059_s27 = smov 124   ;;  %820 = vmatprep.mubr.msk.f32.mxu1 %vm1061_vm0, %v1053_v3  ;;  %vm299_vm6 = vcmask 654336   ;;  %vm273_vm7 = vcmask 1014784   ;;  %vm247_vm8 = vcmask 1031168   ;;  %v439_v57 = vld [vmem:[#allocation6] sm:$0xff] }
  0x3f   : > { %s1060_s30 = smov 126   ;;  %vm467_vm9 = vcmask 588800   ;;  %v615_v63 = vshrl.u32 %v614_v62, 7  ;;  %s823_s29 = smul.u32 24, %s1192_s8 }
  0x40   : > { %425 = vrot.lane.b32.xlu0 %v1210_v2, %s1052_s24  ;;  %397 = vrot.lane.b32.xlu1 %v1204_v0, %s1054_s20  ;;  %s824_s5 = smul.u32 384, %s1040_s15  ;;  %s666_s15 = scalar_lea.sflag [#allocation5], %s1192_s8 }
  0x41   : > { %s220_s6 = scalar_lea.vmem [#allocation8], %s823_s29 }
  0x42   : > { %s682_s10 = sshll.u32 %s220_s6, 4  ;;  %s1282_s10 = int_to_ptr.vmem [resolvable:$true] %s682_s10 }
  0x44   : > { %399 = vrot.lane.b32.xlu0 %v1210_v2, %s1054_s20  ;;  %395 = vrot.lane.b32.xlu1 %v1206_v1, %s1054_s20 }
  0x48   : > { %373 = vrot.lane.b32.xlu1 %v1210_v2, %s1055_s22  ;;  %371 = vrot.lane.b32.xlu0 %v1204_v0, %s1055_s22 }
  0x4c   : > { %427 = vrot.lane.b32.xlu1 %v416_v4, %s1052_s24  ;;  %369 = vrot.lane.b32.xlu0 %v1206_v1, %s1055_s22  ;;  %s1280_s24 = scalar_lea.hbm %s1331_s3, %s824_s5 }
  0x50   : > { %347 = vrot.lane.b32.xlu1 %v1210_v2, %s1056_s19  ;;  %345 = vrot.lane.b32.xlu0 %v1204_v0, %s1056_s19 }
  0x54   : > { %401 = vrot.lane.b32.xlu1 %v416_v4, %s1054_s20  ;;  %343 = vrot.lane.b32.xlu0 %v1206_v1, %s1056_s19  ;;  %s964_s20 = scalar_lea.vmem %s1282_s10, 384 }
  0x55   : > { %p965_p1 = scmp.ne.s32.totalorder %s1282_s10, %s964_s20 }
  0x57   : > { %p966_p8 = pnand %p965_p1, %p1169_p0 }
  0x58   : > { %321 = vrot.lane.b32.xlu1 %v1210_v2, %s1057_s25  ;;  %319 = vrot.lane.b32.xlu0 %v1204_v0, %s1057_s25 }
  0x59   : > { %p967_p13 = pneg %p966_p8 }
  0x5c   : > { %375 = vrot.lane.b32.xlu1 %v416_v4, %s1055_s22  ;;  %317 = vrot.lane.b32.xlu0 %v1206_v1, %s1057_s25  ;;  %s1062_s22 = smov [#allocation8]  }
  0x60   : > { %295 = vrot.lane.b32.xlu1 %v1210_v2, %s1058_s26  ;;  %293 = vrot.lane.b32.xlu0 %v1204_v0, %s1058_s26 }
  0x64   : > { %349 = vrot.lane.b32.xlu1 %v416_v4, %s1056_s19  ;;  %291 = vrot.lane.b32.xlu0 %v1206_v1, %s1058_s26  ;;  %s968_s19 = sshll.u32 %s1062_s22, 4  ;;  %s969_s19 = int_to_ptr.vmem [resolvable:$false] %s968_s19 }
  0x65   : > { %p971_p11 = scmp.lt.s32.totalorder %s1282_s10, %s969_s19 }
  0x68   : > { %269 = vrot.lane.b32.xlu1 %v1210_v2, %s1059_s27  ;;  %267 = vrot.lane.b32.xlu0 %v1204_v0, %s1059_s27 }
  0x6c   : > { %323 = vrot.lane.b32.xlu1 %v416_v4, %s1057_s25  ;;  %265 = vrot.lane.b32.xlu0 %v1206_v1, %s1059_s27  ;;  %s970_s25 = scalar_lea.vmem %s969_s19, 768 }
  0x6d   : > { %p972_p2 = scmp.lt.s32.totalorder %s970_s25, %s964_s20 }
  0x6f   : > { %p973_p12 = por %p972_p2, %p971_p11 }
  0x70   : > { %243 = vrot.lane.b32.xlu1 %v1210_v2, %s1060_s30  ;;  %241 = vrot.lane.b32.xlu0 %v1204_v0, %s1060_s30 }
  0x71   : > { %p974_p3 = pnand %p973_p12, %p967_p13 }
  0x74   : > { %297 = vrot.lane.b32.xlu1 %v416_v4, %s1058_s26  ;;  %239 = vrot.lane.b32.xlu0 %v1206_v1, %s1060_s30 }
  0x78   : > { %245 = vrot.lane.b32.xlu1 %v416_v4, %s1060_s30  ;;  %271 = vrot.lane.b32.xlu0 %v416_v4, %s1059_s27  ;;  %v620_v4 = vsub.s32 1, %v615_v63 }
  0xae   : > { %v424_v5 = vpop.permute.xlu0 %423  ;;  %v422_v6 = vpop.permute.xlu1 %421 }
  0xaf   : > { %v430_v10 = vsel %vm429_vm1, %v422_v6, %v424_v5 }
  0xb2   : > { %v426_v7 = vpop.permute.xlu0 %425  ;;  %v398_v8 = vpop.permute.xlu1 %397 }
  0xb3   : > { %v431_v9 = vsel %vm429_vm1, %v424_v5, %v426_v7 }
  0xb4   : > { %485 = vmatprep.subr.mxu0 %v431_v9 }
  0xb5   : > { %486 = vmatpush1.msra.mxu0 %v430_v10 }
  0xb6   : > { %v400_v11 = vpop.permute.xlu0 %399  ;;  %v396_v12 = vpop.permute.xlu1 %395 }
  0xb7   : > { %v405_v13 = vsel %vm403_vm2, %v398_v8, %v400_v11  ;;  %v404_v14 = vsel %vm403_vm2, %v396_v12, %v398_v8 }
  0xb8   : > { %487 = vmatprep.subr.mxu0 %v405_v13 }
  0xb9   : > { %488 = vmatpush1.msra.mxu0 %v404_v14 }
  0xba   : > { %v374_v15 = vpop.permute.xlu1 %373  ;;  %v372_v16 = vpop.permute.xlu0 %371 }
  0xbb   : > { %v379_v17 = vsel %vm377_vm3, %v372_v16, %v374_v15 }
  0xbc   : > { %489 = vmatprep.subr.mxu0 %v379_v17 }
  0xbe   : > { %v428_v18 = vpop.permute.xlu1 %427  ;;  %v370_v19 = vpop.permute.xlu0 %369 }
  0xbf   : > { %v378_v20 = vsel %vm377_vm3, %v370_v19, %v372_v16  ;;  %v432_v21 = vsel %vm429_vm1, %v426_v7, %v428_v18  ;;  %v624_v7 = vsub.s32 2, %v615_v63 }
  0xc0   : > { %490 = vmatpush1.msra.mxu0 %v378_v20  ;;  %803 = vmatpush3.msra.mxu1 %v432_v21 }
  0xc1   : > { %804 = vmatprep.subr.mxu1 %v1053_v3 }
  0xc2   : > { %v348_v22 = vpop.permute.xlu1 %347  ;;  %v346_v23 = vpop.permute.xlu0 %345 }
  0xc3   : > { %v353_v24 = vsel %vm351_vm4, %v346_v23, %v348_v22 }
  0xc4   : > { %491 = vmatprep.subr.mxu0 %v353_v24 }
  0xc6   : > { %v402_v25 = vpop.permute.xlu1 %401  ;;  %v344_v26 = vpop.permute.xlu0 %343 }
  0xc7   : > { %v352_v27 = vsel %vm351_vm4, %v344_v26, %v346_v23  ;;  %v406_v28 = vsel %vm403_vm2, %v400_v11, %v402_v25 }
  0xc8   : > { %492 = vmatpush1.msra.mxu0 %v352_v27  ;;  %805 = vmatpush3.msra.mxu1 %v406_v28 }
  0xc9   : > { %806 = vmatprep.subr.mxu1 %v1053_v3 }
  0xca   : > { %v322_v29 = vpop.permute.xlu1 %321  ;;  %v320_v30 = vpop.permute.xlu0 %319 }
  0xcb   : > { %v327_v31 = vsel %vm325_vm5, %v320_v30, %v322_v29 }
  0xcc   : > { %493 = vmatprep.subr.mxu0 %v327_v31 }
  0xce   : > { %v376_v32 = vpop.permute.xlu1 %375  ;;  %v318_v33 = vpop.permute.xlu0 %317 }
  0xcf   : > { %v326_v34 = vsel %vm325_vm5, %v318_v33, %v320_v30  ;;  %v380_v35 = vsel %vm377_vm3, %v374_v15, %v376_v32 }
  0xd0   : > { %494 = vmatpush1.msra.mxu0 %v326_v34  ;;  %807 = vmatpush3.msra.mxu1 %v380_v35 }
  0xd1   : > { %808 = vmatprep.subr.mxu1 %v1053_v3 }
  0xd2   : > { %v296_v36 = vpop.permute.xlu1 %295  ;;  %v294_v37 = vpop.permute.xlu0 %293 }
  0xd3   : > { %v301_v38 = vsel %vm299_vm6, %v294_v37, %v296_v36 }
  0xd4   : > { %495 = vmatprep.subr.mxu0 %v301_v38 }
  0xd6   : > { %v350_v39 = vpop.permute.xlu1 %349  ;;  %v292_v40 = vpop.permute.xlu0 %291 }
  0xd7   : > { %v300_v41 = vsel %vm299_vm6, %v292_v40, %v294_v37  ;;  %v354_v42 = vsel %vm351_vm4, %v348_v22, %v350_v39 }
  0xd8   : > { %496 = vmatpush1.msra.mxu0 %v300_v41  ;;  %809 = vmatpush3.msra.mxu1 %v354_v42 }
  0xd9   : > { %810 = vmatprep.subr.mxu1 %v1053_v3 }
  0xda   : > { %v270_v43 = vpop.permute.xlu1 %269  ;;  %v268_v44 = vpop.permute.xlu0 %267 }
  0xdb   : > { %v275_v45 = vsel %vm273_vm7, %v268_v44, %v270_v43 }
  0xdc   : > { %497 = vmatprep.subr.mxu0 %v275_v45 }
  0xde   : > { %v324_v46 = vpop.permute.xlu1 %323  ;;  %v266_v47 = vpop.permute.xlu0 %265 }
  0xdf   : > { %v274_v48 = vsel %vm273_vm7, %v266_v47, %v268_v44  ;;  %v328_v49 = vsel %vm325_vm5, %v322_v29, %v324_v46 }
  0xe0   : > { %498 = vmatpush1.msra.mxu0 %v274_v48  ;;  %811 = vmatpush3.msra.mxu1 %v328_v49 }
  0xe1   : > { %812 = vmatprep.subr.mxu1 %v1053_v3 }
  0xe2   : > { %v244_v50 = vpop.permute.xlu1 %243  ;;  %v242_v51 = vpop.permute.xlu0 %241 }
  0xe3   : > { %v249_v52 = vsel %vm247_vm8, %v242_v51, %v244_v50 }
  0xe4   : > { %499 = vmatprep.subr.mxu0 %v249_v52 }
  0xe6   : > { %v298_v53 = vpop.permute.xlu1 %297  ;;  %v240_v54 = vpop.permute.xlu0 %239 }
  0xe7   : > { %v248_v55 = vsel %vm247_vm8, %v240_v54, %v242_v51  ;;  %v302_v56 = vsel %vm299_vm6, %v296_v36, %v298_v53 }
  0xe8   : > { %500 = vmatpush1.msra.mxu0 %v248_v55  ;;  %813 = vmatpush3.msra.mxu1 %v302_v56 }
  0xe9   : > { %501 = vmatprep.subr.mxu0 %v1204_v0  ;;  %814 = vmatprep.subr.mxu1 %v1053_v3  ;;  %v616_v0 = vsub.s32 0, %v615_v63 }
  0xea   : > { %v246_v58 = vpop.permute.xlu1 %245  ;;  %v272_v59 = vpop.permute.xlu0 %271  ;;  %502 = vmatpush1.msra.mxu0 %v1206_v1  ;;  %v612_v1 = vld [vmem:[%s1330_s2] sm:$0x7] }
  0xeb   : > { %786 = vmatmul.mubr.msk.f32.vlgmr.msra.gmra.mxu0 %vm467_vm9, %v439_v57  ;;  %v276_v60 = vsel %vm273_vm7, %v270_v43, %v272_v59  ;;  %v250_v61 = vsel %vm247_vm8, %v244_v50, %v246_v58  ;;  %v617_v5 = vrot.slane %v612_v1, %v616_v0  ;;  %v621_v6 = vrot.slane %v612_v1, %v620_v4 }
  0xec   : > { %815 = vmatpush3.msra.mxu1 %v276_v60  ;;  %v625_v12 = vrot.slane %v612_v1, %v624_v7 }
  0xed   : > { %816 = vmatprep.subr.mxu1 %v1053_v3 }
  0xee   : > { %817 = vmatpush3.msra.mxu1 %v250_v61 }
  0xef   : > { %818 = vmatprep.subr.mxu1 %v1053_v3 }
  0xf0   : > { %819 = vmatpush3.msra.mxu1 %v1210_v2 }
  0xf1   : > { %821 = vmatmul.mubr.msk.f32.vlgmr.msra.gmra.mxu1 %vm467_vm9, %v439_v57 }
 0x1ab   : > { %v537_v8 = vpop.f32.mrf.mxu0 }
 0x1ac   : > { %v629_v9 = vmul.f32 %v617_v5, %v537_v8 }
 0x1ad   : > { %v539_v10 = vpop.f32.mrf.mxu0 }
 0x1ae   : > { %v630_v11 = vmul.f32 %v621_v6, %v539_v10  ;;  %v636_v3 = vmul.f32 %v629_v9, %v629_v9 }
 0x1b0   : > { %v637_v13 = vmul.f32 %v630_v11, %v630_v11  ;;  %v632_v14 = vadd.f32 %v630_v11, %v629_v9 }
 0x1b1   : > { %v608_v2 = vpop.f32.mrf.mxu1 }
 0x1b2   : > { %v631_v15 = vmul.f32 %v625_v12, %v608_v2  ;;  %v639_v19 = vadd.f32 %v637_v13, %v636_v3 }
 0x1b3   : > { %v822_v16 = vpop.f32.mrf.mxu1 }
 0x1b4   : > { %v633_v17 = vadd.f32 %v632_v14, %v631_v15  ;;  %v638_v18 = vmul.f32 %v631_v15, %v631_v15 }
 0x1b6   : > { %634 = vadd.xlane.f32.xlu0 %v633_v17  ;;  %v640_v20 = vadd.f32 %v639_v19, %v638_v18 }
 0x1b8   : > { %641 = vadd.xlane.f32.xlu1 %v640_v20 }
 0x23f   : > { %v635_v21 = vpop.xlane.xlu0 %634 }
 0x240   : > { %v643_v22 = vmul.f32 0.00390625, %v635_v21 }
 0x241   : > { %v642_v23 = vpop.xlane.xlu1 %641 }
 0x242   : > { %v644_v24 = vmul.f32 0.00390625, %v642_v23  ;;  %v645_v25 = vmul.f32 %v643_v22, %v643_v22  ;;  %v648_v29 = vsub.f32 %v537_v8, %v643_v22  ;;  %v649_v30 = vsub.f32 %v539_v10, %v643_v22 }
 0x243   : > { %v650_v31 = vsub.f32 %v608_v2, %v643_v22 }
 0x244   : > { %v646_v26 = vsub.f32 %v644_v24, %v645_v25 }
 0x246   : > { %v647_v27 = vmax.f32 %v646_v26, 0.0 }
 0x248   : > { %v651_v28 = vadd.f32 1e-05, %v647_v27 }
 0x24a   : > { %908 = vrsqrt.f32 %v651_v28 }
 0x257   : > { %v909_v32 = vpop.eup %908 }
 0x258   : > { %v653_v33 = vmul.f32 %v909_v32, %v648_v29  ;;  %v654_v34 = vmul.f32 %v909_v32, %v649_v30  ;;  %v655_v35 = vmul.f32 %v909_v32, %v650_v31 }
 0x25a   : > { %v656_v36 = vmul.f32 0.2, %v653_v33  ;;  %v657_v37 = vmul.f32 0.2, %v654_v34  ;;  %v658_v38 = vmul.f32 0.2, %v655_v35 }
 0x25c   : > { %v659_v39 = vmax.f32 %v653_v33, %v656_v36  ;;  %v660_v40 = vmax.f32 %v654_v34, %v657_v37  ;;  %v661_v41 = vmax.f32 %v655_v35, %v658_v38 }
 0x25e   : > { %662 = vst [vmem:[%s220_s6] sm:$0xff] %v659_v39  ;;  %663 = vst [vmem:[%s220_s6 + $0x8] sm:$0xff] %v660_v40 }
 0x25f   : > { %664 = vst [vmem:[%s220_s6 + $0x10] sm:$0xff] %v661_v41 }
 0x260   : > { %977 = shalt.err (!%p974_p3)
}
 0x261   : > { %s978_s26 = scalar_lea.hbm %s1280_s24, 384  ;;  %s982_s30 = scalar_lea.hbm %s1331_s3, 768 }
 0x262   : > { %p979_p5 = scmp.ne.s32.totalorder %s1280_s24, %s978_s26  ;;  %p983_p4 = scmp.lt.s32.totalorder %s1280_s24, %s1331_s3 }
 0x263   : > { %p984_p10 = scmp.lt.s32.totalorder %s982_s30, %s978_s26 }
 0x264   : > { %p980_p7 = pnand %p979_p5, %p1169_p0 }
 0x265   : > { %p985_p9 = por %p984_p10, %p983_p4 }
 0x266   : > { %p981_p6 = pneg %p980_p7 }
 0x268   : > { %p986_p1 = pnand %p985_p9, %p981_p6 }
 0x26a   : > { %989 = shalt.err (!%p986_p1)
}
 0x26b   : > { %831 = dma.vmem_to_hbm [thread:$0]  (%p1169_p0), %s1282_s10, 384, %s1280_s24, %s666_s15  }
 0x26c PF: > { %s694_s29 = sand.u32 1, %s1028_s12   ;;  %p1342_p8 = scmp.ne.s32.totalorder %s1336_s23, 0 }
 0x26d   : > { %p1343_p13 = scmp.ge.s32.totalorder %s1048_s17, 2  ;;  %s695_s5 = scalar_lea.sflag [#allocation5], %s694_s29 }
 0x26f   : > { %p842_p11 = pnand %p1343_p13, %p1342_p8 }
 0x271   : > { %p843_p2 = pneg %p842_p11 }
 0x273   : > { %1023 = dma.done.wait (%p843_p2), %s695_s5, 384  }
 0x274   : > { %1025 = vsyncadd (%p843_p2), %s695_s5, 4294966912  ;;  %s20_s17 = sadd.s32 1, %s1048_s17   ;;  %s1344_s12 = smov %s1032_s13 }
 0x275   : > { %p17_p12 = scmp.ge.s32.totalorder %s20_s17, 4   ;;  %s1345_s13 = smov %s1036_s14 }
 0x276   : > { %s1346_s14 = smov %s1175_s9  ;;  %s1347_s15 = smov %s1044_s16 }
 0x277   : > { %s1348_s16 = smov %s1350_s28  ;;  %19 = sbr.rel (!%p17_p12) target bundleno = 7 (0x7), region = 86 }
 0x27c   :  { %700 = vsyncpa [#allocation4], 1 }
 0x27d   :  { %702 = vsyncpa [#allocation4 + $0x1], 1 }
 0x27e   :  { %703 = vsyncpa [#allocation7], 1 }
 0x27f   :  { %704 = vsyncpa [#allocation5], 1 }
 0x280   :  { %706 = vsyncpa [#allocation5 + $0x1], 1 }

</bundles_post_ra>
